<compile_context>
chip_gen: v5e
topology: v5e:2x2
jax: 0.10.0
libtpu: 0.0.40
codegen_flags: <defaults>
</compile_context>

<pallas_src>
import functools

import jax
import jax.numpy as jnp
import numpy as np
from jax import lax
from jax.experimental import pallas as pl
from jax.experimental.pallas import tpu as pltpu


def _round_up(x, m):
    return ((x + m - 1) // m) * m


def _dfl_tile_kernel(pred_ref, label_ref, out_ref, *, n_rows, tile_n):
    i = pl.program_id(0)

    pred = pred_ref[...].astype(jnp.float32)      # (C, T)  f32 compute
    label = label_ref[...]                        # (1, T)  f32

    # disl = label.long()  (labels are non-negative -> trunc == floor)
    disl = label.astype(jnp.int32)                # (1, T)
    disr = disl + 1
    wl = disr.astype(jnp.float32) - label         # (1, T)
    wr = label - disl.astype(jnp.float32)         # (1, T)

    # Row-wise logsumexp over the bin axis (16 sublanes -> lane-dense result).
    m = jnp.max(pred, axis=0, keepdims=True)                              # (1, T)
    lse = m + jnp.log(jnp.sum(jnp.exp(pred - m), axis=0, keepdims=True))  # (1, T)

    # Fused weighted one-hot gather: since wl + wr == 1,
    #   loss = lse - (wl * pred[disl] + wr * pred[disr])
    bins = lax.broadcasted_iota(jnp.int32, pred.shape, 0)                 # (C, T)
    w = jnp.where(bins == disl, wl, 0.0) + jnp.where(bins == disr, wr, 0.0)
    picked = jnp.sum(pred * w, axis=0, keepdims=True)                     # (1, T)
    loss = lse - picked                                                   # (1, T)

    # Mask rows past the true N (last tile may be partial); select (not mul)
    # so garbage/inf in padded lanes cannot leak into the sum.
    col = lax.broadcasted_iota(jnp.int32, loss.shape, 1) + i * tile_n
    loss = jnp.where(col < n_rows, loss, 0.0)

    # Per-tile partial sum, stored lane-dense: value in lane 0, zeros elsewhere.
    partial = jnp.sum(loss, axis=1, keepdims=True)                        # (1, 1)
    lane = lax.broadcasted_iota(jnp.int32, (1, 128), 1)
    out_ref[...] = jnp.where(lane == 0, partial, 0.0)


def dfl_loss(pred, label, *, tile_n=8192):
    """DFL forward (weight=None, reduction='mean', avg_factor=None).

    pred : (N, C) logits (float32 or bfloat16 -- kept in input dtype for the
           HBM read, cast to f32 inside the kernel).
    label: (N,) continuous targets in [0, C-1).
    Returns the scalar mean DFL loss (float32).
    """
    n, c = pred.shape

    # Lane-dense layout: class axis on sublanes, rows on lanes.
    # TODO(synk): if the producer can emit pred already as (C, N), drop this
    # transpose -- it is pure layout plumbing, not compute.
    pred_t = pred.T                                    # (C, N), input dtype
    label2d = label.reshape(1, n).astype(jnp.float32)  # (1, N)

    t = min(tile_n, _round_up(n, 128))                 # multiple of 128
    num_tiles = (n + t - 1) // t

    kernel = functools.partial(_dfl_tile_kernel, n_rows=n, tile_n=t)
    partials = pl.pallas_call(
        kernel,
        out_shape=jax.ShapeDtypeStruct((1, num_tiles * 128), jnp.float32),
        grid_spec=pltpu.PrefetchScalarGridSpec(
            num_scalar_prefetch=0,
            grid=(num_tiles,),
            in_specs=[
                pl.BlockSpec((c, t), lambda i: (0, i)),   # pred (C, N) tile
                pl.BlockSpec((1, t), lambda i: (0, i)),   # label (1, N) tile
            ],
            out_specs=pl.BlockSpec((1, 128), lambda i: (0, i)),
        ),
        compiler_params=pltpu.CompilerParams(
            dimension_semantics=("parallel",)),
    )(pred_t, label2d)

    # Tiny finalize in the wrapper: sum of per-tile partials (zeros elsewhere),
    # scaled by 1/N (true row count, independent of padding/tiling).
    return jnp.sum(partials) * (1.0 / n)


def _dfl_reference(pred, label):
    """Pure-numpy reference mirroring the PyTorch module (default args)."""
    pred = np.asarray(pred, dtype=np.float64)
    label = np.asarray(label, dtype=np.float64)
    disl = label.astype(np.int64)
    disr = disl + 1
    wl = disr.astype(np.float64) - label
    wr = label - disl.astype(np.float64)
    m = pred.max(axis=-1, keepdims=True)
    lse = (m + np.log(np.exp(pred - m).sum(axis=-1, keepdims=True))).squeeze(-1)
    rows = np.arange(pred.shape[0])
    ce_l = lse - pred[rows, disl]
    ce_r = lse - pred[rows, disr]
    loss = ce_l * wl + ce_r * wr
    return loss.mean()


if __name__ == "__main__":
    # Small DFL-like shapes: N anchors = 256, C bins = 16.
    N, C = 256, 16
    key = jax.random.PRNGKey(0)
    kp, kl = jax.random.split(key)
    pred = jax.random.normal(kp, (N, C), dtype=jnp.float32)
    # Continuous regression targets in [0, C-1) so disr stays in-bounds.
    label = jax.random.uniform(kl, (N,), dtype=jnp.float32,
                               minval=0.0, maxval=float(C - 1) - 1e-3)

    out = jax.jit(dfl_loss)(pred, label)
    out = jax.block_until_ready(out)

    ref = _dfl_reference(np.array(pred), np.array(label))
    assert np.allclose(float(out), ref, rtol=1e-5, atol=1e-5), (float(out), ref)

    # TODO(synk): optional `weight` / `avg_factor` / reduction='none'|'sum'
    # branches of weight_reduce_loss are scalar glue and are not kernelized.
    print("KERNEL_OK")
</pallas_src>

<mosaic_0001>
module attributes {stable_mosaic.version = 11 : i64} {
  func.func @_dfl_tile_kernel(%arg0: i32, %arg1: memref<16x256xf32, #tpu.memory_space<vmem>>, %arg2: memref<1x256xf32, #tpu.memory_space<vmem>>, %arg3: memref<1x128xf32, #tpu.memory_space<vmem>>) attributes {dimension_semantics = [#tpu.dimension_semantics<parallel>], iteration_bounds = array<i64: 1>, scalar_prefetch = 0 : i64, scratch_operands = 0 : i64, tpu.core_type = #tpu.core_type<tc>, window_params = [{transform_indices = @transform_0, window_bounds = array<i64: 16, 256>}, {transform_indices = @transform_1, window_bounds = array<i64: 1, 256>}, {transform_indices = @transform_2, window_bounds = array<i64: 1, 128>}]} {
    %c0 = arith.constant 0 : index
    %c0_0 = arith.constant 0 : index
    %0 = vector.load %arg1[%c0, %c0_0] : memref<16x256xf32, #tpu.memory_space<vmem>>, vector<16x256xf32>
    %c0_1 = arith.constant 0 : index
    %c0_2 = arith.constant 0 : index
    %1 = vector.load %arg2[%c0_1, %c0_2] : memref<1x256xf32, #tpu.memory_space<vmem>>, vector<1x256xf32>
    %2 = arith.fptosi %1 : vector<1x256xf32> to vector<1x256xi32>
    %c1_i32 = arith.constant 1 : i32
    %3 = vector.broadcast %c1_i32 : i32 to vector<1x256xi32>
    %4 = arith.addi %2, %3 : vector<1x256xi32>
    %5 = arith.sitofp %4 : vector<1x256xi32> to vector<1x256xf32>
    %6 = arith.subf %5, %1 : vector<1x256xf32>
    %7 = arith.sitofp %2 : vector<1x256xi32> to vector<1x256xf32>
    %8 = arith.subf %1, %7 : vector<1x256xf32>
    %cst = arith.constant dense<0xFF800000> : vector<256xf32>
    %9 = vector.multi_reduction <maximumf>, %0, %cst [0] : vector<16x256xf32> to vector<256xf32>
    %10 = vector.shape_cast %9 : vector<256xf32> to vector<1x256xf32>
    %11 = vector.broadcast %10 : vector<1x256xf32> to vector<16x256xf32>
    %12 = arith.subf %0, %11 : vector<16x256xf32>
    %13 = math.exp %12 : vector<16x256xf32>
    %cst_3 = arith.constant dense<0.000000e+00> : vector<256xf32>
    %14 = vector.multi_reduction <add>, %13, %cst_3 [0] : vector<16x256xf32> to vector<256xf32>
    %15 = vector.shape_cast %14 : vector<256xf32> to vector<1x256xf32>
    %16 = math.log %15 : vector<1x256xf32>
    %17 = arith.addf %10, %16 : vector<1x256xf32>
    %18 = tpu.iota {dimensions = array<i32: 0>} : vector<16x256xi32>
    %19 = vector.broadcast %2 : vector<1x256xi32> to vector<16x256xi32>
    %20 = arith.cmpi eq, %18, %19 : vector<16x256xi32>
    %cst_4 = arith.constant 0.000000e+00 : f32
    %21 = vector.shape_cast %6 : vector<1x256xf32> to vector<1x256xf32>
    %22 = vector.broadcast %21 : vector<1x256xf32> to vector<16x256xf32>
    %23 = vector.broadcast %cst_4 : f32 to vector<16x256xf32>
    %24 = arith.select %20, %22, %23 : vector<16x256xi1>, vector<16x256xf32>
    %25 = vector.broadcast %4 : vector<1x256xi32> to vector<16x256xi32>
    %26 = arith.cmpi eq, %18, %25 : vector<16x256xi32>
    %cst_5 = arith.constant 0.000000e+00 : f32
    %27 = vector.shape_cast %8 : vector<1x256xf32> to vector<1x256xf32>
    %28 = vector.broadcast %27 : vector<1x256xf32> to vector<16x256xf32>
    %29 = vector.broadcast %cst_5 : f32 to vector<16x256xf32>
    %30 = arith.select %26, %28, %29 : vector<16x256xi1>, vector<16x256xf32>
    %31 = arith.addf %24, %30 : vector<16x256xf32>
    %32 = arith.mulf %0, %31 : vector<16x256xf32>
    %cst_6 = arith.constant dense<0.000000e+00> : vector<256xf32>
    %33 = vector.multi_reduction <add>, %32, %cst_6 [0] : vector<16x256xf32> to vector<256xf32>
    %34 = vector.shape_cast %33 : vector<256xf32> to vector<1x256xf32>
    %35 = arith.subf %17, %34 : vector<1x256xf32>
    %36 = tpu.iota {dimensions = array<i32: 1>} : vector<1x256xi32>
    %c256_i32 = arith.constant 256 : i32
    %37 = arith.muli %arg0, %c256_i32 : i32
    %38 = vector.broadcast %37 : i32 to vector<1x256xi32>
    %39 = arith.addi %36, %38 : vector<1x256xi32>
    %c256_i32_7 = arith.constant 256 : i32
    %40 = vector.broadcast %c256_i32_7 : i32 to vector<1x256xi32>
    %41 = arith.cmpi slt, %39, %40 : vector<1x256xi32>
    %cst_8 = arith.constant 0.000000e+00 : f32
    %42 = vector.broadcast %cst_8 : f32 to vector<1x256xf32>
    %43 = arith.select %41, %35, %42 : vector<1x256xi1>, vector<1x256xf32>
    %cst_9 = arith.constant dense<0.000000e+00> : vector<1xf32>
    %44 = vector.multi_reduction <add>, %43, %cst_9 [1] : vector<1x256xf32> to vector<1xf32>
    %45 = vector.shape_cast %44 : vector<1xf32> to vector<1x1xf32>
    %46 = tpu.iota {dimensions = array<i32: 1>} : vector<1x128xi32>
    %c0_i32 = arith.constant 0 : i32
    %47 = vector.broadcast %c0_i32 : i32 to vector<1x128xi32>
    %48 = arith.cmpi eq, %46, %47 : vector<1x128xi32>
    %cst_10 = arith.constant 0.000000e+00 : f32
    %49 = vector.shape_cast %45 : vector<1x1xf32> to vector<1x1xf32>
    %50 = vector.broadcast %49 : vector<1x1xf32> to vector<1x128xf32>
    %51 = vector.broadcast %cst_10 : f32 to vector<1x128xf32>
    %52 = arith.select %48, %50, %51 : vector<1x128xi1>, vector<1x128xf32>
    %c0_11 = arith.constant 0 : index
    %c0_12 = arith.constant 0 : index
    %53 = vector.load %arg3[%c0_11, %c0_12] : memref<1x128xf32, #tpu.memory_space<vmem>>, vector<1x128xf32>
    tpu.vector_store %arg3[%c0_11, %c0_12], %52 {strides = array<i32>} : memref<1x128xf32, #tpu.memory_space<vmem>>, vector<1x128xf32>,
    return
  }
  func.func @transform_0(%arg0: i32) -> (i32, i32) {
    %c0_i32 = arith.constant 0 : i32
    %c0_i32_0 = arith.constant 0 : i32
    return %c0_i32, %arg0 : i32, i32
  }
  func.func @transform_1(%arg0: i32) -> (i32, i32) {
    %c0_i32 = arith.constant 0 : i32
    %c0_i32_0 = arith.constant 0 : i32
    return %c0_i32, %arg0 : i32, i32
  }
  func.func @transform_2(%arg0: i32) -> (i32, i32) {
    %c0_i32 = arith.constant 0 : i32
    %c0_i32_0 = arith.constant 0 : i32
    return %c0_i32, %arg0 : i32, i32
  }
}

</mosaic_0001>

<bundles_post_ra>
// kernel: dfl_loss.1
= control target key start
LH: loop header
LB: loop body
LE: loop exit
PB: predicated region body
PF: predicated region fallthrough
CT: control target
= control target key end

     0   :  { %7 = vsyncpa [#allocation3], 0  ;;  %s209_s12 = smov [#allocation2]   ;;  %s210_s14 = smov 256   ;;  %s304_s0 = inlined_call_operand.hbm [shape: f32[16,256], index: 0, kind: input, shape index: {}]   ;;  %s305_s1 = inlined_call_operand.vmem [shape: f32[1,256], index: 1, kind: input, shape index: {}]   ;;  %s306_s2 = inlined_call_operand.vmem [shape: f32[1,128], index: 2, kind: output, shape index: {}]  }
   0x1   :  { %s12_s11 = sshll.u32 %s304_s0, 4  ;;  %s14_s13 = sshll.u32 %s209_s12, 4  ;;  %s13_s11 = int_to_ptr.hbm [resolvable:$true] %s12_s11  ;;  %s15_s13 = int_to_ptr.vmem [resolvable:$true] %s14_s13 }
   0x2   :  { %s211_s15 = smov 16  }
   0x3   :  { %20 = dma.hbm_to_vmem [thread:$0]  %s13_s11, 512, %s15_s13, [#allocation3], %s210_s14, %s210_s14, %s211_s15  }
   0x4   :  { %207 = dma.done.wait [#allocation3], 512  }
   0x5   :  { %208 = vsyncadd [#allocation3], 4294966784  ;;  %v84_v0 = vlaneseq  ;;  %v230_v1 = vld [vmem:[#allocation2] sm:$0xff]  ;;  %v232_v2 = vld [vmem:[#allocation2 + $0x8] sm:$0xff] }
   0x6   :  { %v234_v3 = vld [vmem:[#allocation2 + $0x10] sm:$0xff]  ;;  %v236_v4 = vld [vmem:[#allocation2 + $0x18] sm:$0xff]  ;;  %v31_v5 = vld [vmem:[%s305_s1] sm:$0x3] }
   0x7   :  { %v38_v6 = vmax.f32 %v230_v1, %v234_v3  ;;  %v85_v7 = vshrl.u32 %v84_v0, 7  ;;  %vm163_vm0 = vcmp.lt.s32.totalorder %v31_v5, 0  ;;  %v164_v8 = vceil.f32 %v31_v5 }
   0x8   :  { %v165_v9 = vfloor.f32 %v31_v5  ;;  %v45_v10 = vmax.f32 %v232_v2, %v236_v4 }
   0x9   :  { %v39_v11 = vrot.slane %v38_v6, 4  ;;  %v86_v17 = vadd.s32 8, %v85_v7 }
   0xa   :  { %v166_v12 = vsel %vm163_vm0, %v164_v8, %v165_v9  ;;  %v46_v13 = vrot.slane %v45_v10, 4 }
   0xb   :  { %v167_v14 = vcvt.f32.s32 %v166_v12  ;;  %v40_v15 = vmax.f32 %v38_v6, %v39_v11 }
   0xc   :  { %v47_v16 = vmax.f32 %v45_v10, %v46_v13 }
   0xd   :  { %v33_v18 = vadd.s32 1, %v167_v14  ;;  %v36_v19 = vcvt.s32.f32 %v167_v14  ;;  %v41_v20 = vrot.slane %v40_v15, 2  ;;  %v87_v21 = vperm.slane %v167_v14, 0 }
   0xe   :  { %v48_v22 = vrot.slane %v47_v16, 2  ;;  %v88_v23 = vperm.slane %v167_v14, 1 }
   0xf   :  { %v34_v24 = vcvt.s32.f32 %v33_v18  ;;  %v37_v25 = vsub.f32 %v31_v5, %v36_v19  ;;  %v42_v26 = vmax.f32 %v40_v15, %v41_v20  ;;  %vm246_vm1 = vcmp.eq.s32.totalorder %v85_v7, %v87_v21 }
  0x10   :  { %v49_v27 = vmax.f32 %v47_v16, %v48_v22  ;;  %vm250_vm2 = vcmp.eq.s32.totalorder %v85_v7, %v88_v23  ;;  %vm254_vm3 = vcmp.eq.s32.totalorder %v86_v17, %v87_v21  ;;  %v102_v33 = vperm.slane %v33_v18, 0 }
  0x11   :  { %v35_v31 = vsub.f32 %v34_v24, %v31_v5  ;;  %v43_v32 = vrot.slane %v42_v26, 1  ;;  %v103_v34 = vperm.slane %v33_v18, 1  ;;  %vm258_vm4 = vcmp.eq.s32.totalorder %v86_v17, %v88_v23 }
  0x12   :  { %v50_v35 = vrot.slane %v49_v27, 1  ;;  %v109_v37 = vperm.slane %v37_v25, 0  ;;  %v110_v38 = vperm.slane %v37_v25, 1  ;;  %vm104_vm5 = vcmp.eq.s32.totalorder %v85_v7, %v102_v33 }
  0x13   :  { %v262_v39 = vmax.f32 %v42_v26, %v43_v32  ;;  %v94_v40 = vperm.slane %v35_v31, 0  ;;  %v95_v41 = vperm.slane %v35_v31, 1  ;;  %vm105_vm6 = vcmp.eq.s32.totalorder %v85_v7, %v103_v34 }
  0x14   :  { %v264_v42 = vmax.f32 %v49_v27, %v50_v35  ;;  %vm266_vm7 = vcmp.eq.s32.totalorder %v86_v17, %v102_v33  ;;  %vm270_vm8 = vcmp.eq.s32.totalorder %v86_v17, %v103_v34  ;;  %v113_v55 = vsel %vm104_vm5, %v109_v37, 0.0 }
  0x15   :  { %v52_v45 = vsub.f32 %v230_v1, %v262_v39  ;;  %v54_v46 = vsub.f32 %v234_v3, %v262_v39  ;;  %v98_v47 = vsel %vm246_vm1, %v94_v40, 0.0  ;;  %v99_v48 = vsel %vm250_vm2, %v95_v41, 0.0 }
  0x16   :  { %v53_v49 = vsub.f32 %v232_v2, %v264_v42  ;;  %v55_v50 = vsub.f32 %v236_v4, %v264_v42  ;;  %v100_v51 = vsel %vm254_vm3, %v94_v40, 0.0  ;;  %v101_v52 = vsel %vm258_vm4, %v95_v41, 0.0 }
  0x17   :  { %v56_v53 = vmul.f32 1.442695, %v52_v45  ;;  %v60_v54 = vmul.f32 1.442695, %v54_v46  ;;  %v114_v56 = vsel %vm105_vm6, %v110_v38, 0.0  ;;  %v115_v59 = vsel %vm266_vm7, %v109_v37, 0.0 }
  0x18   :  { %v58_v57 = vmul.f32 1.442695, %v53_v49  ;;  %v62_v58 = vmul.f32 1.442695, %v55_v50  ;;  %v116_v60 = vsel %vm270_vm8, %v110_v38, 0.0  ;;  %v117_v61 = vadd.f32 %v113_v55, %v98_v47 }
  0x19   :  { %171 = vpow2.f32 %v56_v53  ;;  %v118_v62 = vadd.f32 %v114_v56, %v99_v48  ;;  %v119_v63 = vadd.f32 %v115_v59, %v100_v51  ;;  %v120_v5 = vadd.f32 %v116_v60, %v101_v52 }
  0x1a   :  { %173 = vpow2.f32 %v58_v57  ;;  %v121_v6 = vmul.f32 %v117_v61, %v230_v1  ;;  %v142_v49 = vand.u32 127, %v84_v0 }
  0x1b   :  { %175 = vpow2.f32 %v60_v54  ;;  %v123_v7 = vmul.f32 %v119_v63, %v234_v3  ;;  %v122_v8 = vmul.f32 %v118_v62, %v232_v2  ;;  %v124_v9 = vmul.f32 %v120_v5, %v236_v4 }
  0x1c   :  { %177 = vpow2.f32 %v62_v58  ;;  %vm155_vm9 = vcmp.eq.s32.totalorder %v142_v49, 0 }
  0x1d   :  { %v125_v11 = vadd.f32 %v123_v7, %v121_v6  ;;  %v132_v13 = vadd.f32 %v124_v9, %v122_v8 }
  0x1f   :  { %v172_v10 = vpop.eup %171  ;;  %v126_v18 = vrot.slane %v125_v11, 4  ;;  %v133_v20 = vrot.slane %v132_v13, 4 }
  0x20   :  { %v174_v12 = vpop.eup %173 }
  0x21   :  { %v176_v14 = vpop.eup %175  ;;  %v127_v3 = vadd.f32 %v126_v18, %v125_v11  ;;  %v134_v24 = vadd.f32 %v133_v20, %v132_v13 }
  0x22   :  { %v178_v15 = vpop.eup %177  ;;  %v64_v16 = vadd.f32 %v176_v14, %v172_v10 }
  0x23   :  { %v71_v17 = vadd.f32 %v178_v15, %v174_v12  ;;  %v128_v26 = vrot.slane %v127_v3, 2  ;;  %v135_v28 = vrot.slane %v134_v24, 2 }
  0x24   :  { %v65_v19 = vrot.slane %v64_v16, 4 }
  0x25   :  { %v72_v21 = vrot.slane %v71_v17, 4  ;;  %v129_v32 = vadd.f32 %v128_v26, %v127_v3  ;;  %v136_v33 = vadd.f32 %v135_v28, %v134_v24 }
  0x26   :  { %v66_v1 = vadd.f32 %v65_v19, %v64_v16 }
  0x27   :  { %v73_v22 = vadd.f32 %v72_v21, %v71_v17  ;;  %v130_v34 = vrot.slane %v129_v32, 1  ;;  %v137_v35 = vrot.slane %v136_v33, 1 }
  0x28   :  { %v67_v23 = vrot.slane %v66_v1, 2 }
  0x29   :  { %v74_v2 = vrot.slane %v73_v22, 2  ;;  %v131_v40 = vadd.f32 %v130_v34, %v129_v32  ;;  %v138_v43 = vadd.f32 %v137_v35, %v136_v33 }
  0x2a   :  { %v68_v25 = vadd.f32 %v67_v23, %v66_v1 }
  0x2b   :  { %v75_v4 = vadd.f32 %v74_v2, %v73_v22 }
  0x2c   :  { %v69_v27 = vrot.slane %v68_v25, 1 }
  0x2d   :  { %v76_v29 = vrot.slane %v75_v4, 1 }
  0x2e   :  { %v70_v30 = vadd.f32 %v69_v27, %v68_v25 }
  0x2f   :  { %v77_v31 = vadd.f32 %v76_v29, %v75_v4 }
  0x30   :  { %179 = vlog2.f32 %v70_v30 }
  0x31   :  { %181 = vlog2.f32 %v77_v31 }
  0x36   :  { %v180_v36 = vpop.eup %179 }
  0x37   :  { %v182_v37 = vpop.eup %181  ;;  %v79_v38 = vmul.f32 0.6931472, %v180_v36 }
  0x38   :  { %v81_v41 = vmul.f32 0.6931472, %v182_v37 }
  0x39   :  { %v82_v44 = vadd.f32 %v79_v38, %v262_v39 }
  0x3a   :  { %v83_v45 = vadd.f32 %v81_v41, %v264_v42 }
  0x3b   :  { %v139_v46 = vsub.f32 %v82_v44, %v131_v40 }
  0x3c   :  { %v140_v47 = vsub.f32 %v83_v45, %v138_v43 }
  0x3e   :  { %v152_v48 = vadd.f32 %v140_v47, %v139_v46 }
  0x40   :  { %153 = vadd.xlane.f32.xlu0 %v152_v48 }
  0xb3   :  { %v154_v50 = vpop.xlane.xlu0 %153 }
  0xb4   :  { %v156_v51 = vsel %vm155_vm9, %v154_v50, 0.0 }
  0xb5   :  { %157 = vst [vmem:[%s306_s2] sm:$0x1] %v156_v51 }
  0xb6   :  { %162 = vsyncpa [#allocation3], 1 }

</bundles_post_ra>
